<compile_context>
chip_gen: v6e
topology: v6e:2x2x1
jax: 0.10.0
libtpu: 0.0.40
codegen_flags: <defaults>
</compile_context>

<pallas_src>
import functools

import jax
import jax.numpy as jnp
import numpy as np
from jax.experimental import pallas as pl
from jax.experimental.pallas import tpu as pltpu


SOBEL_X = jnp.array([[1., 0., -1.], [2., 0., -2.], [1., 0., -1.]], jnp.float32)
SOBEL_Y = jnp.array([[1., 2., 1.], [0., 0., 0.], [-1., -2., -1.]], jnp.float32)


# ----------------------------- weight folding ------------------------------

def _fold_ecb_weights(p):
    """Fold all four ECB branches into one 3x3 conv with 3*Cout output channels.

    Exact in real arithmetic: the bias-border padding in SeqConv3x3 equals applying
    the conv1x1 (with bias) to the zero-padded input, so every branch becomes a
    3x3 VALID conv over zero_pad(x) plus a folded bias.
    Returns per-tap weights (9, 3*Cout, Cin) [tap = di*3+dj] and bias (3*Cout, 1).
    """
    hi = jax.lax.Precision.HIGHEST
    Cout, Cin, _, _ = p["w3"].shape

    # conv3x3 + (conv1x1 -> conv3x3)
    k0c = p["c13_k0"][:, :, 0, 0]                                   # (Mid, Cin)
    k1 = p["c13_k1"]                                                # (Cout, Mid, 3, 3)
    w_y = p["w3"] + jnp.einsum("omhw,mi->oihw", k1, k0c, precision=hi)
    b_y = p["b3"] + p["c13_b1"] + jnp.einsum("omhw,m->o", k1, p["c13_b0"], precision=hi)

    def sobel_branch(k0, b0, scale, bias, sobel):
        k0 = k0[:, :, 0, 0]                                         # (Cout, Cin)
        s = scale[:, 0, 0, 0]                                       # (Cout,)
        w = s[:, None, None, None] * k0[:, :, None, None] * sobel[None, None, :, :]
        b = bias + s * b0 * jnp.sum(sobel)                          # sum(sobel)==0; exactness
        return w, b

    w_ex, b_ex = sobel_branch(p["sbx_k0"], p["sbx_b0"], p["sbx_scale"], p["sbx_bias"], SOBEL_X)
    w_ey, b_ey = sobel_branch(p["sby_k0"], p["sby_b0"], p["sby_scale"], p["sby_bias"], SOBEL_Y)

    w_all = jnp.concatenate([w_y, w_ex, w_ey], axis=0)              # (3*Cout, Cin, 3, 3)
    wtaps = jnp.transpose(w_all, (2, 3, 0, 1)).reshape(9, 3 * Cout, Cin)
    bvec = jnp.concatenate([b_y, b_ex, b_ey]).reshape(3 * Cout, 1)
    return wtaps, bvec


# ------------------------------ Pallas kernel -------------------------------

def _make_ecb_kernel(th, Wp, Cin, Cout, compute_dtype):
    L = th * Wp                                    # output pixels per tile (incl. 2 junk cols/row)
    offs = [di * Wp + dj for di in range(3) for dj in range(3)]
    prec = (jax.lax.Precision.HIGHEST
            if jnp.dtype(compute_dtype) == jnp.dtype(jnp.float32) else None)

    def kernel(x_ref, w_ref, b_ref, o_ref):
        # x_ref: (1, 1, Cin, Lx)   halo'd activation tile, pixels in lanes (auto-pipelined)
        # w_ref: (9, 3*Cout, Cin)  folded per-tap weights
        # b_ref: (3*Cout, 1)       folded bias (f32)
        # o_ref: (1, 1, Cout, L)   lane-dense output tile
        acc = jnp.zeros((3 * Cout, L), jnp.float32)
        for t, off in enumerate(offs):
            # Statically lane-shifted tap view straight from VMEM -> MXU; the MXU's f32
            # accumulation sums the 9 taps (no VPU/XLU im2col concat, no patch tensor).
            xs = x_ref[0, 0, :, off:off + L]                       # (Cin, L)
            acc = acc + jnp.dot(w_ref[t], xs,
                                preferred_element_type=jnp.float32,
                                precision=prec)
        z = acc + b_ref[...]                                       # (3*Cout, L), f32
        y = z[:Cout]
        ex = z[Cout:2 * Cout]
        ey = z[2 * Cout:]
        # Edge math on lane-dense f32 vregs (VPU/EUP); store is lane-dense (last dim L).
        o_ref[0, 0] = (y * jnp.sqrt(ex * ex + ey * ey)).astype(o_ref.dtype)
        # TODO(synk): optionally fuse the PixelShuffle(2) lane interleave into this store
        # (channel->width interleave); kept in the single fused wrapper pass for now.

    return kernel


def _auto_tile_rows(N, H, W, Cin, Cout, in_itemsize, vmem_limit_bytes):
    """Largest row-tile whose double-buffered working set fits the VMEM budget."""
    Wp = W + 2
    pad8 = lambda n: -(-n // 8) * 8
    pad128 = lambda n: -(-n // 128) * 128
    budget = 0.45 * vmem_limit_bytes            # headroom for Mosaic temporaries / relayouts

    def vmem_bytes(th):
        L, Lx = th * Wp, (th + 3) * Wp
        in_b = 2 * pad8(Cin) * pad128(Lx) * in_itemsize   # double-buffered input tiles
        out_b = 2 * pad8(Cout) * pad128(L) * 4            # double-buffered output tiles (f32)
        tmp_b = 2 * pad8(3 * Cout) * pad128(L) * 4        # f32 accumulator + edge temporaries
        return in_b + out_b + tmp_b

    th_full = pad8(H)                                     # whole-image tile for small H
    best, th = 8, 8
    while th <= min(th_full, 512):
        if vmem_bytes(th) <= budget:
            best = th
        th += 8
    if N == 1 and best >= H and H > 8:
        # keep >=2 parallel grid steps so both v7x TensorCores (megacore) get work
        best = max(8, pad8((H + 1) // 2))
    return best


def ecb_forward(x_nchw, params, *, compute_dtype=jnp.bfloat16, out_dtype=jnp.float32,
                tile_rows=None, vmem_limit_bytes=48 * 1024 * 1024):
    """Fused ECB forward: y = PixelShuffle(2)((conv3x3+conv1x1_3x3)(x) * sqrt(ex^2+ey^2)).

    vmem_limit_bytes: 48 MiB default is safe for v7x (64 MiB/TC); pass ~96-100 MiB on
    v5e/v6e (128 MiB VMEM) together with a larger tile_rows sweep for peak HBM roofline.
    """
    N, Cin, H, W = x_nchw.shape
    Cout = params["w3"].shape[0]
    assert Cout % 4 == 0, "PixelShuffle(2) requires out_planes divisible by 4"
    Co4 = Cout // 4
    Wp = W + 2

    itemsize = jnp.dtype(compute_dtype).itemsize
    th = int(tile_rows) if tile_rows is not None else _auto_tile_rows(
        N, H, W, Cin, Cout, itemsize, vmem_limit_bytes)
    th = max(1, th)
    n_blocks = -(-H // th)
    Hpad = n_blocks * th
    L = th * Wp                    # output pixels per tile (flat, padded-width grid)
    Lx = (th + 3) * Wp             # halo'd input pixels per tile (covers the +2*Wp+2 overhang)

    wtaps, bvec = _fold_ecb_weights(params)
    wtaps = wtaps.astype(compute_dtype)        # bf16 MXU inputs on v5e/v6e/v7x; f32 accumulate
    bvec = bvec.astype(jnp.float32)

    # Zero-pad (conv halo + tail rows) and cut into OVERLAPPING per-tile row slabs so a
    # plain auto-pipelined BlockSpec double-buffers the input DMA behind the compute
    # (only 3 duplicated rows of extra HBM per tile).  Pixels go in lanes.
    xpad = jnp.pad(x_nchw, ((0, 0), (0, 0), (1, Hpad - H + 2), (1, 1)))   # (N,Cin,Hpad+3,Wp)
    xtiles = jnp.stack([xpad[:, :, i * th: i * th + th + 3, :] for i in range(n_blocks)],
                       axis=1)                                            # (N,nb,Cin,th+3,Wp)
    xtiles = xtiles.reshape(N, n_blocks, Cin, Lx).astype(compute_dtype)

    kernel = _make_ecb_kernel(th, Wp, Cin, Cout, compute_dtype)

    out = pl.pallas_call(
        kernel,
        out_shape=jax.ShapeDtypeStruct((N, n_blocks, Cout, L), out_dtype),
        grid=(N, n_blocks),
        in_specs=[
            pl.BlockSpec((1, 1, Cin, Lx), lambda n, i: (n, i, 0, 0)),     # halo'd tile
            pl.BlockSpec((9, 3 * Cout, Cin), lambda n, i: (0, 0, 0)),     # folded tap weights
            pl.BlockSpec((3 * Cout, 1), lambda n, i: (0, 0)),             # folded bias
        ],
        out_specs=pl.BlockSpec((1, 1, Cout, L), lambda n, i: (n, i, 0, 0)),
        compiler_params=pltpu.CompilerParams(
            dimension_semantics=("parallel", "parallel"),
            vmem_limit_bytes=int(vmem_limit_bytes),
        ),
    )(xtiles, wtaps, bvec)

    # ONE fused XLA pass: split channels (Co4, a, b) for PixelShuffle(2), drop the 2 junk
    # conv columns and junk tail rows (correctness concern #3), interleave rows with `a`
    # and columns with `b`.  The trailing merges are contiguous reshapes (free).
    out7 = out.reshape(N, n_blocks, Co4, 2, 2, th, Wp)
    y = jnp.transpose(out7, (0, 2, 1, 5, 3, 6, 4))[:, :, :, :, :, :W, :]  # (N,Co4,nb,th,2,W,2)
    y = y.reshape(N, Co4, 2 * Hpad, 2 * W)[:, :, :2 * H, :]
    return y


# ------------------------- deterministic parameters ------------------------

def init_params(key, Cin, Cout, depth_multiplier):
    Mid = int(Cout * depth_multiplier)
    ks = jax.random.split(key, 14)
    n = lambda k, s, sc: jax.random.normal(k, s, jnp.float32) * sc
    return {
        "w3": n(ks[0], (Cout, Cin, 3, 3), 0.1),
        "b3": n(ks[1], (Cout,), 0.1),
        "c13_k0": n(ks[2], (Mid, Cin, 1, 1), 0.1),
        "c13_b0": n(ks[3], (Mid,), 0.1),
        "c13_k1": n(ks[4], (Cout, Mid, 3, 3), 0.1),
        "c13_b1": n(ks[5], (Cout,), 0.1),
        "sbx_k0": n(ks[6], (Cout, Cin, 1, 1), 0.1),
        "sbx_b0": n(ks[7], (Cout,), 0.1),
        "sbx_scale": n(ks[8], (Cout, 1, 1, 1), 0.001),
        "sbx_bias": n(ks[9], (Cout,), 0.001),
        "sby_k0": n(ks[10], (Cout, Cin, 1, 1), 0.1),
        "sby_b0": n(ks[11], (Cout,), 0.1),
        "sby_scale": n(ks[12], (Cout, 1, 1, 1), 0.001),
        "sby_bias": n(ks[13], (Cout,), 0.001),
    }


# -------------------- pure-JAX reference (mirrors torch) -------------------

def _conv2d_ref(x, w, b, padding, groups=1):
    y = jax.lax.conv_general_dilated(
        x, w, window_strides=(1, 1), padding=padding,
        dimension_numbers=("NCHW", "OIHW", "NCHW"),
        feature_group_count=groups,
        precision=jax.lax.Precision.HIGHEST)
    return y + b.reshape(1, -1, 1, 1)


def _pad_bias_nchw(y, b):
    b = b.reshape(1, -1, 1, 1)
    return jnp.pad(y - b, ((0, 0), (0, 0), (1, 1), (1, 1))) + b


def _pixel_shuffle_nchw(y, r):
    N, C, H, W = y.shape
    y = y.reshape(N, C // (r * r), r, r, H, W)
    y = jnp.transpose(y, (0, 1, 4, 2, 5, 3))
    return y.reshape(N, C // (r * r), H * r, W * r)


def ecb_reference(x, p):
    Cout = p["w3"].shape[0]
    # conv1x1 -> conv3x3 branch
    y0 = _conv2d_ref(x, p["c13_k0"], p["c13_b0"], "VALID")
    y_c13 = _conv2d_ref(_pad_bias_nchw(y0, p["c13_b0"]),
                        p["c13_k1"], p["c13_b1"], "VALID")
    # sobel-x branch
    y0 = _conv2d_ref(x, p["sbx_k0"], p["sbx_b0"], "VALID")
    mx = jnp.broadcast_to(SOBEL_X, (Cout, 1, 3, 3))
    ex = _conv2d_ref(_pad_bias_nchw(y0, p["sbx_b0"]),
                     p["sbx_scale"] * mx, p["sbx_bias"], "VALID", groups=Cout)
    # sobel-y branch
    y0 = _conv2d_ref(x, p["sby_k0"], p["sby_b0"], "VALID")
    my = jnp.broadcast_to(SOBEL_Y, (Cout, 1, 3, 3))
    ey = _conv2d_ref(_pad_bias_nchw(y0, p["sby_b0"]),
                     p["sby_scale"] * my, p["sby_bias"], "VALID", groups=Cout)
    edge = jnp.sqrt(ex ** 2 + ey ** 2)
    y = _conv2d_ref(x, p["w3"], p["b3"], [(1, 1), (1, 1)]) + y_c13
    return _pixel_shuffle_nchw(y * edge, 2)


# ----------------------------------- main -----------------------------------

if __name__ == "__main__":
    N, Cin, Cout, H, W = 2, 4, 8, 16, 16   # out_planes divisible by 4 (PixelShuffle(2))
    depth_multiplier = 2.0
    key = jax.random.PRNGKey(0)
    kx, kp = jax.random.split(key)
    x = jax.random.normal(kx, (N, Cin, H, W), jnp.float32)
    params = init_params(kp, Cin, Cout, depth_multiplier)

    ref = ecb_reference(x, params)

    # bf16 MXU-input path (recommended default on v5e/v6e/v7x; f32 accumulate + edge math).
    fwd_bf16 = jax.jit(functools.partial(ecb_forward, compute_dtype=jnp.bfloat16))
    out_bf16 = jax.block_until_ready(fwd_bf16(x, params))
    assert out_bf16.shape == (N, Cout // 4, 2 * H, 2 * W), out_bf16.shape
    np.testing.assert_allclose(np.asarray(out_bf16), np.asarray(ref),
                               rtol=5e-2, atol=1e-3)

    # f32 path: in-kernel dots use precision=HIGHEST (review correctness concern #1).
    fwd_f32 = jax.jit(functools.partial(ecb_forward, compute_dtype=jnp.float32))
    out_f32 = jax.block_until_ready(fwd_f32(x, params))
    np.testing.assert_allclose(np.asarray(out_f32), np.asarray(ref),
                               rtol=2e-2, atol=5e-6)

    print("KERNEL_OK")
</pallas_src>

<mosaic_0001>
module attributes {stable_mosaic.version = 11 : i64} {
  func.func @kernel(%arg0: i32, %arg1: i32, %arg2: memref<1x1x4x342xbf16, #tpu.memory_space<vmem>>, %arg3: memref<9x24x4xbf16, #tpu.memory_space<vmem>>, %arg4: memref<24x1xf32, #tpu.memory_space<vmem>>, %arg5: memref<1x1x8x288xf32, #tpu.memory_space<vmem>>) attributes {dimension_semantics = [#tpu.dimension_semantics<parallel>, #tpu.dimension_semantics<parallel>], iteration_bounds = array<i64: 2, 1>, scalar_prefetch = 0 : i64, scratch_operands = 0 : i64, tpu.core_type = #tpu.core_type<tc>, window_params = [{transform_indices = @transform_0, window_bounds = array<i64: 1, 1, 4, 342>}, {pipeline_mode = #tpu.pipeline_mode<synchronous>, transform_indices = @transform_1, window_bounds = array<i64: 9, 24, 4>}, {pipeline_mode = #tpu.pipeline_mode<synchronous>, transform_indices = @transform_2, window_bounds = array<i64: 24, 1>}, {transform_indices = @transform_3, window_bounds = array<i64: 1, 1, 8, 288>}]} {
    %cst = arith.constant 0.000000e+00 : f32
    %0 = vector.broadcast %cst : f32 to vector<24x288xf32>
    %c0 = arith.constant 0 : index
    %c0_0 = arith.constant 0 : index
    %c0_1 = arith.constant 0 : index
    %c0_2 = arith.constant 0 : index
    %1 = vector.load %arg2[%c0, %c0_0, %c0_1, %c0_2] : memref<1x1x4x342xbf16, #tpu.memory_space<vmem>>, vector<1x1x4x288xbf16>
    %2 = vector.shape_cast %1 : vector<1x1x4x288xbf16> to vector<4x288xbf16>
    %c0_3 = arith.constant 0 : index
    %c0_4 = arith.constant 0 : index
    %c0_5 = arith.constant 0 : index
    %3 = vector.load %arg3[%c0_3, %c0_4, %c0_5] : memref<9x24x4xbf16, #tpu.memory_space<vmem>>, vector<1x24x4xbf16>
    %4 = vector.shape_cast %3 : vector<1x24x4xbf16> to vector<24x4xbf16>
    %cst_6 = arith.constant dense<0.000000e+00> : vector<24x288xf32>
    %5 = tpu.matmul %4, %2, %cst_6 {dimension_numbers = #tpu.dot_dimension_numbers<[1], [0], [0], [1], [0, 0, 1, 1], [], []>} : vector<24x4xbf16>, vector<4x288xbf16>, vector<24x288xf32> -> vector<24x288xf32>
    %6 = arith.addf %0, %5 : vector<24x288xf32>
    %c0_7 = arith.constant 0 : index
    %c0_8 = arith.constant 0 : index
    %c0_9 = arith.constant 0 : index
    %c1 = arith.constant 1 : index
    %7 = vector.load %arg2[%c0_7, %c0_8, %c0_9, %c1] : memref<1x1x4x342xbf16, #tpu.memory_space<vmem>>, vector<1x1x4x288xbf16>
    %8 = vector.shape_cast %7 : vector<1x1x4x288xbf16> to vector<4x288xbf16>
    %c1_10 = arith.constant 1 : index
    %c0_11 = arith.constant 0 : index
    %c0_12 = arith.constant 0 : index
    %9 = vector.load %arg3[%c1_10, %c0_11, %c0_12] : memref<9x24x4xbf16, #tpu.memory_space<vmem>>, vector<1x24x4xbf16>
    %10 = vector.shape_cast %9 : vector<1x24x4xbf16> to vector<24x4xbf16>
    %cst_13 = arith.constant dense<0.000000e+00> : vector<24x288xf32>
    %11 = tpu.matmul %10, %8, %cst_13 {dimension_numbers = #tpu.dot_dimension_numbers<[1], [0], [0], [1], [0, 0, 1, 1], [], []>} : vector<24x4xbf16>, vector<4x288xbf16>, vector<24x288xf32> -> vector<24x288xf32>
    %12 = arith.addf %6, %11 : vector<24x288xf32>
    %c0_14 = arith.constant 0 : index
    %c0_15 = arith.constant 0 : index
    %c0_16 = arith.constant 0 : index
    %c2 = arith.constant 2 : index
    %13 = vector.load %arg2[%c0_14, %c0_15, %c0_16, %c2] : memref<1x1x4x342xbf16, #tpu.memory_space<vmem>>, vector<1x1x4x288xbf16>
    %14 = vector.shape_cast %13 : vector<1x1x4x288xbf16> to vector<4x288xbf16>
    %c2_17 = arith.constant 2 : index
    %c0_18 = arith.constant 0 : index
    %c0_19 = arith.constant 0 : index
    %15 = vector.load %arg3[%c2_17, %c0_18, %c0_19] : memref<9x24x4xbf16, #tpu.memory_space<vmem>>, vector<1x24x4xbf16>
    %16 = vector.shape_cast %15 : vector<1x24x4xbf16> to vector<24x4xbf16>
    %cst_20 = arith.constant dense<0.000000e+00> : vector<24x288xf32>
    %17 = tpu.matmul %16, %14, %cst_20 {dimension_numbers = #tpu.dot_dimension_numbers<[1], [0], [0], [1], [0, 0, 1, 1], [], []>} : vector<24x4xbf16>, vector<4x288xbf16>, vector<24x288xf32> -> vector<24x288xf32>
    %18 = arith.addf %12, %17 : vector<24x288xf32>
    %c0_21 = arith.constant 0 : index
    %c0_22 = arith.constant 0 : index
    %c0_23 = arith.constant 0 : index
    %c18 = arith.constant 18 : index
    %19 = vector.load %arg2[%c0_21, %c0_22, %c0_23, %c18] : memref<1x1x4x342xbf16, #tpu.memory_space<vmem>>, vector<1x1x4x288xbf16>
    %20 = vector.shape_cast %19 : vector<1x1x4x288xbf16> to vector<4x288xbf16>
    %c3 = arith.constant 3 : index
    %c0_24 = arith.constant 0 : index
    %c0_25 = arith.constant 0 : index
    %21 = vector.load %arg3[%c3, %c0_24, %c0_25] : memref<9x24x4xbf16, #tpu.memory_space<vmem>>, vector<1x24x4xbf16>
    %22 = vector.shape_cast %21 : vector<1x24x4xbf16> to vector<24x4xbf16>
    %cst_26 = arith.constant dense<0.000000e+00> : vector<24x288xf32>
    %23 = tpu.matmul %22, %20, %cst_26 {dimension_numbers = #tpu.dot_dimension_numbers<[1], [0], [0], [1], [0, 0, 1, 1], [], []>} : vector<24x4xbf16>, vector<4x288xbf16>, vector<24x288xf32> -> vector<24x288xf32>
    %24 = arith.addf %18, %23 : vector<24x288xf32>
    %c0_27 = arith.constant 0 : index
    %c0_28 = arith.constant 0 : index
    %c0_29 = arith.constant 0 : index
    %c19 = arith.constant 19 : index
    %25 = vector.load %arg2[%c0_27, %c0_28, %c0_29, %c19] : memref<1x1x4x342xbf16, #tpu.memory_space<vmem>>, vector<1x1x4x288xbf16>
    %26 = vector.shape_cast %25 : vector<1x1x4x288xbf16> to vector<4x288xbf16>
    %c4 = arith.constant 4 : index
    %c0_30 = arith.constant 0 : index
    %c0_31 = arith.constant 0 : index
    %27 = vector.load %arg3[%c4, %c0_30, %c0_31] : memref<9x24x4xbf16, #tpu.memory_space<vmem>>, vector<1x24x4xbf16>
    %28 = vector.shape_cast %27 : vector<1x24x4xbf16> to vector<24x4xbf16>
    %cst_32 = arith.constant dense<0.000000e+00> : vector<24x288xf32>
    %29 = tpu.matmul %28, %26, %cst_32 {dimension_numbers = #tpu.dot_dimension_numbers<[1], [0], [0], [1], [0, 0, 1, 1], [], []>} : vector<24x4xbf16>, vector<4x288xbf16>, vector<24x288xf32> -> vector<24x288xf32>
    %30 = arith.addf %24, %29 : vector<24x288xf32>
    %c0_33 = arith.constant 0 : index
    %c0_34 = arith.constant 0 : index
    %c0_35 = arith.constant 0 : index
    %c20 = arith.constant 20 : index
    %31 = vector.load %arg2[%c0_33, %c0_34, %c0_35, %c20] : memref<1x1x4x342xbf16, #tpu.memory_space<vmem>>, vector<1x1x4x288xbf16>
    %32 = vector.shape_cast %31 : vector<1x1x4x288xbf16> to vector<4x288xbf16>
    %c5 = arith.constant 5 : index
    %c0_36 = arith.constant 0 : index
    %c0_37 = arith.constant 0 : index
    %33 = vector.load %arg3[%c5, %c0_36, %c0_37] : memref<9x24x4xbf16, #tpu.memory_space<vmem>>, vector<1x24x4xbf16>
    %34 = vector.shape_cast %33 : vector<1x24x4xbf16> to vector<24x4xbf16>
    %cst_38 = arith.constant dense<0.000000e+00> : vector<24x288xf32>
    %35 = tpu.matmul %34, %32, %cst_38 {dimension_numbers = #tpu.dot_dimension_numbers<[1], [0], [0], [1], [0, 0, 1, 1], [], []>} : vector<24x4xbf16>, vector<4x288xbf16>, vector<24x288xf32> -> vector<24x288xf32>
    %36 = arith.addf %30, %35 : vector<24x288xf32>
    %c0_39 = arith.constant 0 : index
    %c0_40 = arith.constant 0 : index
    %c0_41 = arith.constant 0 : index
    %c36 = arith.constant 36 : index
    %37 = vector.load %arg2[%c0_39, %c0_40, %c0_41, %c36] : memref<1x1x4x342xbf16, #tpu.memory_space<vmem>>, vector<1x1x4x288xbf16>
    %38 = vector.shape_cast %37 : vector<1x1x4x288xbf16> to vector<4x288xbf16>
    %c6 = arith.constant 6 : index
    %c0_42 = arith.constant 0 : index
    %c0_43 = arith.constant 0 : index
    %39 = vector.load %arg3[%c6, %c0_42, %c0_43] : memref<9x24x4xbf16, #tpu.memory_space<vmem>>, vector<1x24x4xbf16>
    %40 = vector.shape_cast %39 : vector<1x24x4xbf16> to vector<24x4xbf16>
    %cst_44 = arith.constant dense<0.000000e+00> : vector<24x288xf32>
    %41 = tpu.matmul %40, %38, %cst_44 {dimension_numbers = #tpu.dot_dimension_numbers<[1], [0], [0], [1], [0, 0, 1, 1], [], []>} : vector<24x4xbf16>, vector<4x288xbf16>, vector<24x288xf32> -> vector<24x288xf32>
    %42 = arith.addf %36, %41 : vector<24x288xf32>
    %c0_45 = arith.constant 0 : index
    %c0_46 = arith.constant 0 : index
    %c0_47 = arith.constant 0 : index
    %c37 = arith.constant 37 : index
    %43 = vector.load %arg2[%c0_45, %c0_46, %c0_47, %c37] : memref<1x1x4x342xbf16, #tpu.memory_space<vmem>>, vector<1x1x4x288xbf16>
    %44 = vector.shape_cast %43 : vector<1x1x4x288xbf16> to vector<4x288xbf16>
    %c7 = arith.constant 7 : index
    %c0_48 = arith.constant 0 : index
    %c0_49 = arith.constant 0 : index
    %45 = vector.load %arg3[%c7, %c0_48, %c0_49] : memref<9x24x4xbf16, #tpu.memory_space<vmem>>, vector<1x24x4xbf16>
    %46 = vector.shape_cast %45 : vector<1x24x4xbf16> to vector<24x4xbf16>
    %cst_50 = arith.constant dense<0.000000e+00> : vector<24x288xf32>
    %47 = tpu.matmul %46, %44, %cst_50 {dimension_numbers = #tpu.dot_dimension_numbers<[1], [0], [0], [1], [0, 0, 1, 1], [], []>} : vector<24x4xbf16>, vector<4x288xbf16>, vector<24x288xf32> -> vector<24x288xf32>
    %48 = arith.addf %42, %47 : vector<24x288xf32>
    %c0_51 = arith.constant 0 : index
    %c0_52 = arith.constant 0 : index
    %c0_53 = arith.constant 0 : index
    %c38 = arith.constant 38 : index
    %49 = vector.load %arg2[%c0_51, %c0_52, %c0_53, %c38] : memref<1x1x4x342xbf16, #tpu.memory_space<vmem>>, vector<1x1x4x288xbf16>
    %50 = vector.shape_cast %49 : vector<1x1x4x288xbf16> to vector<4x288xbf16>
    %c8 = arith.constant 8 : index
    %c0_54 = arith.constant 0 : index
    %c0_55 = arith.constant 0 : index
    %51 = vector.load %arg3[%c8, %c0_54, %c0_55] : memref<9x24x4xbf16, #tpu.memory_space<vmem>>, vector<1x24x4xbf16>
    %52 = vector.shape_cast %51 : vector<1x24x4xbf16> to vector<24x4xbf16>
    %cst_56 = arith.constant dense<0.000000e+00> : vector<24x288xf32>
    %53 = tpu.matmul %52, %50, %cst_56 {dimension_numbers = #tpu.dot_dimension_numbers<[1], [0], [0], [1], [0, 0, 1, 1], [], []>} : vector<24x4xbf16>, vector<4x288xbf16>, vector<24x288xf32> -> vector<24x288xf32>
    %54 = arith.addf %48, %53 : vector<24x288xf32>
    %c0_57 = arith.constant 0 : index
    %c0_58 = arith.constant 0 : index
    %55 = vector.load %arg4[%c0_57, %c0_58] : memref<24x1xf32, #tpu.memory_space<vmem>>, vector<24x1xf32>
    %56 = vector.broadcast %55 : vector<24x1xf32> to vector<24x288xf32>
    %57 = arith.addf %54, %56 : vector<24x288xf32>
    %58 = vector.extract_strided_slice %57 {offsets = [0, 0], sizes = [8, 288], strides = [1, 1]} : vector<24x288xf32> to vector<8x288xf32>
    %59 = vector.extract_strided_slice %57 {offsets = [8, 0], sizes = [8, 288], strides = [1, 1]} : vector<24x288xf32> to vector<8x288xf32>
    %60 = vector.extract_strided_slice %57 {offsets = [16, 0], sizes = [8, 288], strides = [1, 1]} : vector<24x288xf32> to vector<8x288xf32>
    %61 = arith.mulf %59, %59 : vector<8x288xf32>
    %62 = arith.mulf %60, %60 : vector<8x288xf32>
    %63 = arith.addf %61, %62 : vector<8x288xf32>
    %64 = math.sqrt %63 : vector<8x288xf32>
    %65 = arith.mulf %58, %64 : vector<8x288xf32>
    %c0_59 = arith.constant 0 : index
    %c0_60 = arith.constant 0 : index
    %c0_61 = arith.constant 0 : index
    %c0_62 = arith.constant 0 : index
    %66 = vector.load %arg5[%c0_59, %c0_60, %c0_61, %c0_62] : memref<1x1x8x288xf32, #tpu.memory_space<vmem>>, vector<1x1x8x288xf32>
    %67 = vector.shape_cast %66 : vector<1x1x8x288xf32> to vector<8x288xf32>
    %68 = vector.shape_cast %65 : vector<8x288xf32> to vector<1x1x8x288xf32>
    tpu.vector_store %arg5[%c0_59, %c0_60, %c0_61, %c0_62], %68 {strides = array<i32>} : memref<1x1x8x288xf32, #tpu.memory_space<vmem>>, vector<1x1x8x288xf32>,
    return
  }
  func.func @transform_0(%arg0: i32, %arg1: i32) -> (i32, i32, i32, i32) {
    %c0_i32 = arith.constant 0 : i32
    %c0_i32_0 = arith.constant 0 : i32
    %c0_i32_1 = arith.constant 0 : i32
    return %arg0, %arg1, %c0_i32, %c0_i32_0 : i32, i32, i32, i32
  }
  func.func @transform_1(%arg0: i32, %arg1: i32) -> (i32, i32, i32) {
    %c0_i32 = arith.constant 0 : i32
    %c0_i32_0 = arith.constant 0 : i32
    %c0_i32_1 = arith.constant 0 : i32
    %c0_i32_2 = arith.constant 0 : i32
    return %c0_i32, %c0_i32_0, %c0_i32_1 : i32, i32, i32
  }
  func.func @transform_2(%arg0: i32, %arg1: i32) -> (i32, i32) {
    %c0_i32 = arith.constant 0 : i32
    %c0_i32_0 = arith.constant 0 : i32
    %c0_i32_1 = arith.constant 0 : i32
    return %c0_i32, %c0_i32_0 : i32, i32
  }
  func.func @transform_3(%arg0: i32, %arg1: i32) -> (i32, i32, i32, i32) {
    %c0_i32 = arith.constant 0 : i32
    %c0_i32_0 = arith.constant 0 : i32
    %c0_i32_1 = arith.constant 0 : i32
    return %arg0, %arg1, %c0_i32, %c0_i32_0 : i32, i32, i32, i32
  }
}

</mosaic_0001>

<bundles_post_ra>
// kernel: ecb_forward.1
= control target key start
LH: loop header
LB: loop body
LE: loop exit
PB: predicated region body
PF: predicated region fallthrough
CT: control target
= control target key end

     0   :  { %s2088_s12 = smov 0   ;;  %s2090_s13 = smov 0   ;;  %s2428_s0 = inlined_call_operand.vmem [shape: bf16[2,1,4,342], index: 0, kind: input, shape index: {}]   ;;  %s2429_s1 = inlined_call_operand.vmem [shape: bf16[9,24,4], index: 1, kind: input, shape index: {}]   ;;  %s2430_s2 = inlined_call_operand.vmem [shape: f32[24,1], index: 2, kind: input, shape index: {}]   ;;  %s2431_s3 = inlined_call_operand.vmem [shape: f32[2,1,8,288], index: 3, kind: output, shape index: {}]  }
   0x1   :  { %s2092_s14 = smov 0  }
   0x2 LB: > { %s25_s15 = sadd.s32 1, %s2052_s13  ;;  %p1782_p0 = scmp.ge.s32.totalorder %s2056_s14, 1  ;;  %s2056_s14 = sphi %s2092_s14, %s13_s14   ;;  %s2052_s13 = sphi %s2090_s13, %s2433_s13   ;;  %s2048_s12 = sphi %s2088_s12, %s2432_s12  }
   0x3   : > { %p27_p1 = scmp.ge.s32.totalorder %s25_s15, 2  ;;  %p157_p2 = scmp.lt.s32.totalorder %s2056_s14, 3 }
   0x5   : > { %s2435_s15 = smov (%p27_p1, %s25_s15), 0  ;;  %p158_p3 = pnand %p1782_p0, %p157_p2 }
   0x6   : > { %p189_p4 = scmp.lt.s32.totalorder (!%p158_p3), %s2048_s12, 1  ;;  %s2060_s22 = smov (!%p158_p3), 127  }
   0x7   : > { %161 = sbr.rel (%p158_p3) target bundleno = 473 (0x1d9), region = 32  ;;  %s2061_s23 = smov (!%p158_p3), 126  }
   0x8   : > { %s2062_s24 = smov (!%p158_p3), 110   ;;  %s2063_s25 = smov (!%p158_p3), 109  }
   0x9   : > { %s2064_s26 = smov (!%p158_p3), 108   ;;  %s2065_s27 = smov (!%p158_p3), 92  }
   0xa   : > { %s2066_s28 = smov (!%p158_p3), 91   ;;  %s2067_s29 = smov (!%p158_p3), 90  }
   0xc   : > { %v229_v0 = vlaneseq  ;;  %v2058_v1 = vmov 1983009808   ;;  %s2437_s12 = smov (!%p189_p4, %s2048_s12), 1  ;;  %v2111_v4 = vld [vmem:[%s2429_s1 + $0xc] sm:$0xff]   ;;  %vm250_vm0 = vcmask 31744   ;;  %v2059_v6 = vmov 0  }
   0xd   : > { %v227_v2 = vunpack.c.l.s4 %v2058_v1  ;;  %s1964_s18 = smul.u32 6, %s2437_s12  ;;  %1903 = vmatprep.mubr.msk.bf16.mxu1 %vm250_vm0, %v2111_v4  ;;  %299 = vmatprep.mubr.bf16.mxu0 %v2059_v6  ;;  %v1624_v48 = vld [vmem:[%s2430_s2 + $0x10] sm:$0xff]  ;;  %v1623_v49 = vld [vmem:[%s2430_s2 + $0x8] sm:$0xff]  ;;  %v1622_v50 = vld [vmem:[%s2430_s2] sm:$0xff]  ;;  %vm257_vm1 = vcmask 1041408   ;;  %vm247_vm2 = vcmask 1039360  }
   0xe   : > { %v230_v3 = vshrl.u32 %v229_v0, 7  ;;  %2001 = vset.pattern.permute.xlu1 %v2059_v6  ;;  %2000 = vset.pattern.permute.xlu0 %v2059_v6  ;;  %v2011_v54 = vld [vmem:[%s2429_s1 + $0x14] ss:$0 sps:$4 sm:$0xff]   ;;  %vm524_vm3 = vcmask 1031168   ;;  %v2012_v0 = vld [vmem:[%s2429_s1] sm:$0xff]   ;;  %vm686_vm4 = vcmask 900096  }
   0xf   : > { %v228_v5 = vunpack.c.0.s8 %v227_v2  ;;  %s2124_s21 = scalar_lea.vmem %s2428_s0, %s1964_s18  ;;  %vm848_vm5 = vcmask 891904   ;;  %vm1010_vm6 = vcmask 883712   ;;  %vm1172_vm7 = vcmask 752640  }
  0x10   : > { %v208_v8 = vld [vmem:[%s2124_s21] sm:$0x3f]  ;;  %vm1334_vm8 = vcmask 744448   ;;  %vm1496_vm9 = vcmask 736256   ;;  %vm1684_vm12 = vcmask 261120  }
  0x11   : > { %v2117_v7 = vsub.s32 %v228_v5, %v230_v3  ;;  %v225_v10 = vcombine.high %v208_v8, %v208_v8  ;;  %v488_v11 = vld [vmem:[%s2124_s21] sm:$0x3f] }
  0x12   : > { %v502_v15 = vcombine.high %v488_v11, %v488_v11  ;;  %v650_v17 = vld [vmem:[%s2124_s21] sm:$0x3f] }
  0x13   : > { %v2128_v9 = vrot.slane %v208_v8, %v2117_v7  ;;  %v2133_v12 = vrot.slane %v225_v10, %v2117_v7  ;;  %v509_v14 = vrot.slane %v488_v11, %v2117_v7  ;;  %v671_v19 = vrot.slane %v650_v17, %v2117_v7  ;;  %v812_v22 = vld [vmem:[%s2124_s21] sm:$0x3f]  ;;  %v2013_v8 = vld [vmem:[%s2429_s1 + $0x8] ss:$0 sps:$4 sm:$0xff]  }
  0x14   : > { %v516_v18 = vrot.slane %v502_v15, %v2117_v7  ;;  %v664_v20 = vcombine.high %v650_v17, %v650_v17  ;;  %v833_v24 = vrot.slane %v812_v22, %v2117_v7  ;;  %v826_v25 = vcombine.high %v812_v22, %v812_v22  ;;  %v974_v27 = vld [vmem:[%s2124_s21] sm:$0x3f] }
  0x15   : > { %241 = vrot.lane.b32.xlu0 %v2128_v9, %s2060_s22  ;;  %v2137_v13 = vcombine.high %v2128_v9, %v2128_v9  ;;  %245 = vrot.lane.b32.xlu1 %v2133_v12, %s2060_s22  ;;  %v517_v16 = vcombine.high %v509_v14, %v509_v14  ;;  %v679_v21 = vcombine.high %v671_v19, %v671_v19  ;;  %v1136_v32 = vld [vmem:[%s2124_s21] sm:$0x3f]  ;;  %v381_v58 = vsel %vm257_vm1, %v2128_v9, 0  ;;  %v2014_v9 = vld [vmem:[%s2429_s1 + $0x18] sm:$0xff]  }
  0x16   : > { %v678_v23 = vrot.slane %v664_v20, %v2117_v7  ;;  %v841_v26 = vcombine.high %v833_v24, %v833_v24  ;;  %v840_v28 = vrot.slane %v826_v25, %v2117_v7  ;;  %v995_v29 = vrot.slane %v974_v27, %v2117_v7  ;;  %v1298_v37 = vld [vmem:[%s2124_s21] sm:$0x3f] }
  0x17   : > { %v988_v30 = vcombine.high %v974_v27, %v974_v27  ;;  %v1157_v34 = vrot.slane %v1136_v32, %v2117_v7  ;;  %v1150_v35 = vcombine.high %v1136_v32, %v1136_v32  ;;  %v1319_v39 = vrot.slane %v1298_v37, %v2117_v7  ;;  %v1460_v42 = vld [vmem:[%s2124_s21] sm:$0x3f]  ;;  %v2018_v27 = vld [vmem:[%s2429_s1 + $0x30] sm:$0xff]  }
  0x18   : > { %v1003_v31 = vcombine.high %v995_v29, %v995_v29  ;;  %v1312_v40 = vcombine.high %v1298_v37, %v1298_v37  ;;  %v1481_v44 = vrot.slane %v1460_v42, %v2117_v7  ;;  %v1474_v45 = vcombine.high %v1460_v42, %v1460_v42  ;;  %v2015_v15 = vld [vmem:[%s2429_s1 + $0x20] ss:$0 sps:$4 sm:$0xff]  }
  0x19   : > { %243 = vrot.lane.b32.xlu0 %v2137_v13, %s2060_s22  ;;  %518 = vrot.lane.b32.xlu1 %v509_v14, %s2061_s23  ;;  %v1002_v33 = vrot.slane %v988_v30, %v2117_v7  ;;  %v1165_v36 = vcombine.high %v1157_v34, %v1157_v34  ;;  %v1164_v38 = vrot.slane %v1150_v35, %v2117_v7  ;;  %v387_v61 = vsel %vm257_vm1, %v2133_v12, 0 }
  0x1a   : > { %v1327_v41 = vcombine.high %v1319_v39, %v1319_v39  ;;  %v1326_v43 = vrot.slane %v1312_v40, %v2117_v7  ;;  %v1489_v46 = vcombine.high %v1481_v44, %v1481_v44  ;;  %v1488_v47 = vrot.slane %v1474_v45, %v2117_v7  ;;  %v2022_v45 = vld [vmem:[%s2429_s1 + $0x48] sm:$0xff]  }
  0x1d   : > { %520 = vrot.lane.b32.xlu0 %v517_v16, %s2061_s23  ;;  %522 = vrot.lane.b32.xlu1 %v516_v18, %s2061_s23 }
  0x21   : > { %680 = vrot.lane.b32.xlu0 %v671_v19, %s2062_s24  ;;  %682 = vrot.lane.b32.xlu1 %v679_v21, %s2062_s24  ;;  %v2016_v21 = vld [vmem:[%s2429_s1 + $0x24] sm:$0xff]  }
  0x25   : > { %684 = vrot.lane.b32.xlu0 %v678_v23, %s2062_s24  ;;  %842 = vrot.lane.b32.xlu1 %v833_v24, %s2063_s25  ;;  %s1965_s24 = smul.u32 24, %s2437_s12 }
  0x29   : > { %844 = vrot.lane.b32.xlu0 %v841_v26, %s2063_s25  ;;  %846 = vrot.lane.b32.xlu1 %v840_v28, %s2063_s25  ;;  %v2017_v26 = vld [vmem:[%s2429_s1 + $0x2c] ss:$0 sps:$4 sm:$0xff]  }
  0x2d   : > { %1004 = vrot.lane.b32.xlu0 %v995_v29, %s2064_s26  ;;  %1006 = vrot.lane.b32.xlu1 %v1003_v31, %s2064_s26 }
  0x31   : > { %1008 = vrot.lane.b32.xlu0 %v1002_v33, %s2064_s26  ;;  %1166 = vrot.lane.b32.xlu1 %v1157_v34, %s2065_s27  ;;  %v2019_v33 = vld [vmem:[%s2429_s1 + $0x38] ss:$0 sps:$4 sm:$0xff]  }
  0x35   : > { %1168 = vrot.lane.b32.xlu0 %v1165_v36, %s2065_s27  ;;  %1170 = vrot.lane.b32.xlu1 %v1164_v38, %s2065_s27  ;;  %s206_s27 = scalar_lea.vmem %s2431_s3, %s1965_s24 }
  0x39   : > { %1328 = vrot.lane.b32.xlu0 %v1319_v39, %s2066_s28  ;;  %1330 = vrot.lane.b32.xlu1 %v1327_v41, %s2066_s28  ;;  %v2020_v39 = vld [vmem:[%s2429_s1 + $0x3c] sm:$0xff]  }
  0x3d   : > { %1332 = vrot.lane.b32.xlu0 %v1326_v43, %s2066_s28  ;;  %1490 = vrot.lane.b32.xlu1 %v1481_v44, %s2067_s29  ;;  %v2021_v44 = vld [vmem:[%s2429_s1 + $0x44] ss:$0 sps:$4 sm:$0xff]  }
  0x41   : > { %1492 = vrot.lane.b32.xlu0 %v1489_v46, %s2067_s29  ;;  %1494 = vrot.lane.b32.xlu1 %v1488_v47, %s2067_s29 }
  0x45   : > { %1637 = vperm.xlu1 %2001, %v1624_v48   ;;  %1632 = vperm.xlu0 %2000, %v1623_v49  }
  0x49   : > { %1627 = vperm.xlu1 %2001, %v1622_v50   ;;  %v2023_v50 = vld [vmem:[%s2429_s1 + $0x50] ss:$0 sps:$4 sm:$0xff]  }
  0x87   : > { %v242_v51 = vpop.permute.xlu0 %241  ;;  %v246_v52 = vpop.permute.xlu1 %245 }
  0x88   : > { %1955 = vmatprep.subr.msk.bf16.mxu1 %vm257_vm1, %v246_v52  ;;  %v265_v53 = vsel %vm257_vm1, %v246_v52, 0 }
  0x89   : > { %1902 = vmatpush3.bf16.msra.mxu1 %v265_v53 }
  0x8a   : > { %1797 = vmatprep.subr.msk.bf16.mxu1 %vm257_vm1, %v2137_v13 }
  0x8b   : > { %v244_v55 = vpop.permute.xlu0 %243  ;;  %v519_v60 = vpop.permute.xlu1 %518 }
  0x8c   : > { %v249_v56 = vsel %vm247_vm2, %v244_v55, %v246_v52  ;;  %v248_v57 = vsel %vm247_vm2, %v242_v51, %v244_v55  ;;  %1904 = vmatmul.mubr.msk.bf16.vlgmr.msra.gmra.mxu1 %vm250_vm0, %v2011_v54 }
  0x8d   : > { %1790 = vmatprep.subr.msk.bf16.mxu0 %vm257_vm1, %v249_v56  ;;  %v259_v59 = vsel %vm257_vm1, %v248_v57, 0  ;;  %404 = vmatpush1.bf16.msra.mxu1 %v381_v58  ;;  %v2024_v56 = vld [vmem:[%s2429_s1 + $0x54] sm:$0xff]   ;;  %v2025_v58 = vld [vmem:[%s2429_s1 + $0x5c] ss:$0 sps:$4 sm:$0xff]  }
  0x8e   : > { %282 = vmatpush1.bf16.msra.mxu0 %v259_v59  ;;  %421 = vmatprep.mubr.bf16.mxu1 %v2059_v6  ;;  %v2026_v59 = vld [vmem:[%s2429_s1 + $0x60] sm:$0xff]  }
  0x8f   : > { %1956 = vmatprep.subr.msk.bf16.mxu0 %vm257_vm1, %v2133_v12  ;;  %v521_v62 = vpop.permute.xlu0 %520  ;;  %v523_v63 = vpop.permute.xlu1 %522 }
  0x90   : > { %v526_v1 = vsel %vm524_vm3, %v521_v62, %v523_v63  ;;  %1957 = vmatprep.subr.msk.bf16.mxu1 %vm257_vm1, %v523_v63  ;;  %v540_v3 = vsel %vm257_vm1, %v523_v63, 0  ;;  %v525_v10 = vsel %vm524_vm3, %v519_v60, %v521_v62  ;;  %v2027_v62 = vld [vmem:[%s2429_s1 + $0x68] ss:$0 sps:$4 sm:$0xff]  }
  0x91   : > { %1791 = vmatmul.mubr.msk.bf16.vlgmr.msra.gmra.mxu0 %vm250_vm0, %v2111_v4  ;;  %v534_v12 = vsel %vm257_vm1, %v525_v10, 0 }
  0x92   : > { %1908 = vmatpush3.bf16.msra.mxu0 %v387_v61  ;;  %309 = vmatprep.mubr.bf16.mxu0 %v2059_v6 }
  0x93   : > { %1807 = vmatprep.subr.msk.bf16.mxu0 %vm257_vm1, %v526_v1  ;;  %v681_v2 = vpop.permute.xlu0 %680  ;;  %v683_v5 = vpop.permute.xlu1 %682 }
  0x94   : > { %1798 = vmatmul.mubr.msk.bf16.vlgmr.msra.gmra.mxu1 %vm250_vm0, %v2012_v0  ;;  %v687_v14 = vsel %vm686_vm4, %v681_v2, %v683_v5 }
  0x95   : > { %431 = vmatprep.mubr.bf16.mxu1 %v2059_v6  ;;  %1914 = vmatpush3.bf16.msra.mxu1 %v540_v3  ;;  %v696_v16 = vsel %vm257_vm1, %v687_v14, 0 }
  0x97   : > { %v685_v4 = vpop.permute.xlu0 %684  ;;  %v843_v13 = vpop.permute.xlu1 %842 }
  0x98   : > { %v688_v7 = vsel %vm686_vm4, %v683_v5, %v685_v4  ;;  %v702_v19 = vsel %vm257_vm1, %v685_v4, 0 }
  0x99   : > { %1792 = vmatmul.mubr.msk.bf16.gmra.mxu0 %vm250_vm0, %v2011_v54  ;;  %1817 = vmatprep.subr.msk.bf16.mxu1 %vm257_vm1, %v688_v7 }
  0x9a   : > { %1909 = vmatprep.mubr.msk.bf16.mxu0 %vm250_vm0, %v2012_v0 }
  0x9b   : > { %v845_v11 = vpop.permute.xlu0 %844  ;;  %v847_v18 = vpop.permute.xlu1 %846 }
  0x9c   : > { %1799 = vmatmul.mubr.msk.bf16.gmra.mxu1 %vm250_vm0, %v2013_v8  ;;  %v850_v20 = vsel %vm848_vm5, %v845_v11, %v847_v18  ;;  %v864_v24 = vsel %vm257_vm1, %v847_v18, 0  ;;  %v849_v28 = vsel %vm848_vm5, %v843_v13, %v845_v11 }
  0x9d   : > { %1915 = vmatprep.mubr.msk.bf16.mxu1 %vm250_vm0, %v2014_v9  ;;  %v858_v30 = vsel %vm257_vm1, %v849_v28, 0 }
  0x9f   : > { %v1005_v17 = vpop.permute.xlu0 %1004  ;;  %v1007_v23 = vpop.permute.xlu1 %1006 }
  0xa0   : > { %v1011_v32 = vsel %vm1010_vm6, %v1005_v17, %v1007_v23 }
  0xa1   : > { %1910 = vmatmul.mubr.msk.bf16.vlgmr.msra.gmra.mxu0 %vm250_vm0, %v2013_v8  ;;  %v1020_v34 = vsel %vm257_vm1, %v1011_v32, 0 }
  0xa2   : > { %557 = vmatpush1.bf16.msra.mxu0 %v534_v12  ;;  %574 = vmatprep.mubr.bf16.mxu0 %v2059_v6 }
  0xa3   : > { %1958 = vmatprep.subr.msk.bf16.mxu0 %vm257_vm1, %v685_v4  ;;  %v1009_v22 = vpop.permute.xlu0 %1008  ;;  %v1167_v31 = vpop.permute.xlu1 %1166 }
  0xa4   : > { %1916 = vmatmul.mubr.msk.bf16.vlgmr.msra.gmra.mxu1 %vm250_vm0, %v2015_v15  ;;  %v1012_v25 = vsel %vm1010_vm6, %v1007_v23, %v1009_v22  ;;  %v1026_v37 = vsel %vm257_vm1, %v1009_v22, 0 }
  0xa5   : > { %719 = vmatpush1.bf16.msra.mxu1 %v696_v16  ;;  %736 = vmatprep.mubr.bf16.mxu1 %v2059_v6 }
  0xa6   : > { %1959 = vmatprep.subr.msk.bf16.mxu1 %vm257_vm1, %v847_v18 }
  0xa7   : > { %v1169_v29 = vpop.permute.xlu0 %1168  ;;  %v1171_v36 = vpop.permute.xlu1 %1170 }
  0xa8   : > { %v1174_v38 = vsel %vm1172_vm7, %v1169_v29, %v1171_v36  ;;  %v1188_v42 = vsel %vm257_vm1, %v1171_v36, 0  ;;  %v1173_v46 = vsel %vm1172_vm7, %v1167_v31, %v1169_v29 }
  0xa9   : > { %1808 = vmatmul.mubr.msk.bf16.vlgmr.msra.gmra.mxu0 %vm250_vm0, %v2014_v9  ;;  %v1182_v47 = vsel %vm257_vm1, %v1173_v46, 0 }
  0xaa   : > { %1920 = vmatpush3.bf16.msra.mxu0 %v702_v19  ;;  %584 = vmatprep.mubr.bf16.mxu0 %v2059_v6 }
  0xab   : > { %1827 = vmatprep.subr.msk.bf16.mxu0 %vm257_vm1, %v850_v20  ;;  %v1329_v35 = vpop.permute.xlu0 %1328  ;;  %v1331_v41 = vpop.permute.xlu1 %1330 }
  0xac   : > { %1818 = vmatmul.mubr.msk.bf16.vlgmr.msra.gmra.mxu1 %vm250_vm0, %v2016_v21  ;;  %v1335_v49 = vsel %vm1334_vm8, %v1329_v35, %v1331_v41 }
  0xad   : > { %746 = vmatprep.mubr.bf16.mxu1 %v2059_v6  ;;  %1926 = vmatpush3.bf16.msra.mxu1 %v864_v24  ;;  %v1344_v51 = vsel %vm257_vm1, %v1335_v49, 0 }
  0xae   : > { %1837 = vmatprep.subr.msk.bf16.mxu1 %vm257_vm1, %v1012_v25 }
  0xaf   : > { %v1333_v40 = vpop.permute.xlu0 %1332  ;;  %v1491_v48 = vpop.permute.xlu1 %1490 }
  0xb0   : > { %v1336_v43 = vsel %vm1334_vm8, %v1331_v41, %v1333_v40  ;;  %v1350_v54 = vsel %vm257_vm1, %v1333_v40, 0 }
  0xb1   : > { %1809 = vmatmul.mubr.msk.bf16.gmra.mxu0 %vm250_vm0, %v2015_v15 }
  0xb2   : > { %1921 = vmatprep.mubr.msk.bf16.mxu0 %vm250_vm0, %v2016_v21 }
  0xb3   : > { %v1493_v52 = vpop.permute.xlu0 %1492  ;;  %v1495_v53 = vpop.permute.xlu1 %1494 }
  0xb4   : > { %1819 = vmatmul.mubr.msk.bf16.gmra.mxu1 %vm250_vm0, %v2017_v26  ;;  %v1498_v55 = vsel %vm1496_vm9, %v1493_v52, %v1495_v53  ;;  %v1512_v57 = vsel %vm257_vm1, %v1495_v53, 0  ;;  %v1497_v60 = vsel %vm1496_vm9, %v1491_v48, %v1493_v52 }
  0xb5   : > { %1927 = vmatprep.mubr.msk.bf16.mxu1 %vm250_vm0, %v2018_v27  ;;  %v1506_v61 = vsel %vm257_vm1, %v1497_v60, 0 }
  0xb9   : > { %1922 = vmatmul.mubr.msk.bf16.vlgmr.msra.gmra.mxu0 %vm250_vm0, %v2017_v26 }
  0xba   : > { %881 = vmatpush1.bf16.msra.mxu0 %v858_v30  ;;  %898 = vmatprep.mubr.bf16.mxu0 %v2059_v6 }
  0xbb   : > { %1960 = vmatprep.subr.msk.bf16.mxu0 %vm257_vm1, %v1009_v22 }
  0xbc   : > { %1928 = vmatmul.mubr.msk.bf16.vlgmr.msra.gmra.mxu1 %vm250_vm0, %v2019_v33 }
  0xbd   : > { %1043 = vmatpush1.bf16.msra.mxu1 %v1020_v34  ;;  %1060 = vmatprep.mubr.bf16.mxu1 %v2059_v6 }
  0xbe   : > { %1961 = vmatprep.subr.msk.bf16.mxu1 %vm257_vm1, %v1171_v36 }
  0xc1   : > { %1828 = vmatmul.mubr.msk.bf16.vlgmr.msra.gmra.mxu0 %vm250_vm0, %v2018_v27 }
  0xc2   : > { %1932 = vmatpush3.bf16.msra.mxu0 %v1026_v37  ;;  %908 = vmatprep.mubr.bf16.mxu0 %v2059_v6 }
  0xc3   : > { %1847 = vmatprep.subr.msk.bf16.mxu0 %vm257_vm1, %v1174_v38 }
  0xc4   : > { %1838 = vmatmul.mubr.msk.bf16.vlgmr.msra.gmra.mxu1 %vm250_vm0, %v2020_v39 }
  0xc5   : > { %1070 = vmatprep.mubr.bf16.mxu1 %v2059_v6  ;;  %1938 = vmatpush3.bf16.msra.mxu1 %v1188_v42 }
  0xc6   : > { %1857 = vmatprep.subr.msk.bf16.mxu1 %vm257_vm1, %v1336_v43 }
  0xc9   : > { %1829 = vmatmul.mubr.msk.bf16.gmra.mxu0 %vm250_vm0, %v2019_v33 }
  0xca   : > { %1933 = vmatprep.mubr.msk.bf16.mxu0 %vm250_vm0, %v2020_v39 }
  0xcc   : > { %1839 = vmatmul.mubr.msk.bf16.gmra.mxu1 %vm250_vm0, %v2021_v44 }
  0xcd   : > { %1939 = vmatprep.mubr.msk.bf16.mxu1 %vm250_vm0, %v2022_v45 }
  0xd1   : > { %1934 = vmatmul.mubr.msk.bf16.vlgmr.msra.gmra.mxu0 %vm250_vm0, %v2021_v44 }
  0xd2   : > { %1205 = vmatpush1.bf16.msra.mxu0 %v1182_v47  ;;  %1222 = vmatprep.mubr.bf16.mxu0 %v2059_v6 }
  0xd3   : > { %1962 = vmatprep.subr.msk.bf16.mxu0 %vm257_vm1, %v1333_v40 }
  0xd4   : > { %1940 = vmatmul.mubr.msk.bf16.vlgmr.msra.gmra.mxu1 %vm250_vm0, %v2023_v50 }
  0xd5   : > { %1367 = vmatpush1.bf16.msra.mxu1 %v1344_v51  ;;  %1384 = vmatprep.mubr.bf16.mxu1 %v2059_v6 }
  0xd6   : > { %1963 = vmatprep.subr.msk.bf16.mxu1 %vm257_vm1, %v1495_v53 }
  0xd9   : > { %1848 = vmatmul.mubr.msk.bf16.vlgmr.msra.gmra.mxu0 %vm250_vm0, %v2022_v45 }
  0xda   : > { %1944 = vmatpush3.bf16.msra.mxu0 %v1350_v54  ;;  %1232 = vmatprep.mubr.bf16.mxu0 %v2059_v6 }
  0xdb   : > { %1867 = vmatprep.subr.msk.bf16.mxu0 %vm257_vm1, %v1498_v55 }
  0xdc   : > { %1858 = vmatmul.mubr.msk.bf16.vlgmr.msra.gmra.mxu1 %vm250_vm0, %v2024_v56 }
  0xdd   : > { %1394 = vmatprep.mubr.bf16.mxu1 %v2059_v6  ;;  %1950 = vmatpush3.bf16.msra.mxu1 %v1512_v57 }
  0xe1   : > { %1849 = vmatmul.mubr.msk.bf16.gmra.mxu0 %vm250_vm0, %v2023_v50 }
  0xe2   : > { %1945 = vmatprep.mubr.msk.bf16.mxu0 %vm250_vm0, %v2024_v56 }
  0xe4   : > { %1859 = vmatmul.mubr.msk.bf16.gmra.mxu1 %vm250_vm0, %v2025_v58 }
  0xe5   : > { %1951 = vmatprep.mubr.msk.bf16.mxu1 %vm250_vm0, %v2026_v59 }
  0xe9   : > { %1946 = vmatmul.mubr.msk.bf16.vlgmr.msra.gmra.mxu0 %vm250_vm0, %v2025_v58 }
  0xea   : > { %1529 = vmatpush1.bf16.msra.mxu0 %v1506_v61  ;;  %1546 = vmatprep.mubr.bf16.mxu0 %v2059_v6 }
  0xec   : > { %1952 = vmatmul.mubr.msk.bf16.vlgmr.msra.gmra.mxu1 %vm250_vm0, %v2027_v62 }
  0xf1   : > { %1868 = vmatmul.mubr.msk.bf16.vlgmr.msra.gmra.mxu0 %vm250_vm0, %v2026_v59 }
  0xf2   : > { %1556 = vmatprep.mubr.bf16.mxu0 %v2059_v6 }
  0xf9   : > { %1869 = vmatmul.mubr.msk.bf16.gmra.mxu0 %vm250_vm0, %v2027_v62 }
 0x14c   : > { %v1905_v63 = vpop.f32.mrf.mxu1 }
 0x14e   : > { %v352_v0 = vpop.f32.mrf.mxu1 }
 0x150   : > { %v1906_v2 = vpop.f32.mrf.mxu1 }
 0x151   : > { %v301_v1 = vpop.f32.mrf.mxu0 }
 0x152   : > { %v2328_v5 = vpop.f32.mrf.mxu1 }
 0x153   : > { %v303_v3 = vpop.f32.mrf.mxu0 }
 0x154   : > { %v423_v7 = vpop.f32.mrf.mxu1 }
 0x155   : > { %v305_v4 = vpop.f32.mrf.mxu0  ;;  %v424_v8 = vadd.f32 %v423_v7, %v301_v1 }
 0x156   : > { %v425_v10 = vpop.f32.mrf.mxu1 }
 0x157   : > { %v307_v9 = vpop.f32.mrf.mxu0  ;;  %v426_v11 = vadd.f32 %v425_v10, %v303_v3 }
 0x158   : > { %v427_v13 = vpop.f32.mrf.mxu1 }
 0x159   : > { %v311_v12 = vpop.f32.mrf.mxu0  ;;  %v428_v14 = vadd.f32 %v427_v13, %v305_v4 }
 0x15a   : > { %v429_v6 = vpop.f32.mrf.mxu1 }
 0x15b   : > { %v313_v15 = vpop.f32.mrf.mxu0  ;;  %v430_v16 = vadd.f32 %v429_v6, %v307_v9 }
 0x15c   : > { %v433_v18 = vpop.f32.mrf.mxu1 }
 0x15d   : > { %v315_v17 = vpop.f32.mrf.mxu0  ;;  %v2330_v19 = vadd.f32 %v433_v18, %v311_v12 }
 0x15e   : > { %v435_v21 = vpop.f32.mrf.mxu1 }
 0x15f   : > { %v316_v20 = vpop.f32.mrf.mxu0  ;;  %v2332_v22 = vadd.f32 %v435_v21, %v313_v15 }
 0x160   : > { %v437_v25 = vpop.f32.mrf.mxu1 }
 0x161   : > { %v1911_v23 = vpop.f32.mrf.mxu0 }
 0x162   : > { %v483_v24 = vadd.f32 %v1911_v23, %v1905_v63  ;;  %v438_v28 = vpop.f32.mrf.mxu1 }
 0x163   : > { %v474_v26 = vpop.f32.mrf.mxu0 }
 0x164   : > { %v475_v27 = vadd.f32 %v474_v26, %v352_v0  ;;  %v1917_v30 = vpop.f32.mrf.mxu1 }
 0x165   : > { %v1912_v29 = vpop.f32.mrf.mxu0  ;;  %v2334_v31 = vadd.f32 %v1917_v30, %v483_v24 }
 0x166   : > { %v627_v33 = vpop.f32.mrf.mxu1 }
 0x167   : > { %v2336_v32 = vpop.f32.mrf.mxu0  ;;  %v643_v34 = vadd.f32 %v627_v33, %v475_v27 }
 0x168   : > { %v1918_v37 = vpop.f32.mrf.mxu1 }
 0x169   : > { %v576_v35 = vpop.f32.mrf.mxu0 }
 0x16a   : > { %v641_v36 = vadd.f32 %v576_v35, %v424_v8  ;;  %v2338_v40 = vpop.f32.mrf.mxu1 }
 0x16b   : > { %v578_v38 = vpop.f32.mrf.mxu0 }
 0x16c   : > { %v642_v39 = vadd.f32 %v578_v38, %v426_v11  ;;  %v738_v43 = vpop.f32.mrf.mxu1 }
 0x16d   : > { %v580_v41 = vpop.f32.mrf.mxu0  ;;  %v803_v44 = vadd.f32 %v738_v43, %v641_v36 }
 0x16e   : > { %v2340_v42 = vadd.f32 %v580_v41, %v428_v14  ;;  %v740_v47 = vpop.f32.mrf.mxu1 }
 0x16f   : > { %v582_v45 = vpop.f32.mrf.mxu0  ;;  %v804_v48 = vadd.f32 %v740_v47, %v642_v39 }
 0x170   : > { %v2342_v46 = vadd.f32 %v582_v45, %v430_v16  ;;  %v2346_v50 = vpop.f32.mrf.mxu1 }
 0x171   : > { %v2344_v49 = vpop.f32.mrf.mxu0 }
 0x172   : > { %v2350_v52 = vpop.f32.mrf.mxu1 }
 0x173   : > { %v2348_v51 = vpop.f32.mrf.mxu0 }
 0x174   : > { %v2352_v54 = vpop.f32.mrf.mxu1 }
 0x175   : > { %v590_v53 = vpop.f32.mrf.mxu0 }
 0x176   : > { %v2354_v56 = vpop.f32.mrf.mxu1 }
 0x177   : > { %v591_v55 = vpop.f32.mrf.mxu0 }
 0x178   : > { %v752_v58 = vpop.f32.mrf.mxu1 }
 0x179   : > { %v1923_v57 = vpop.f32.mrf.mxu0 }
 0x17a   : > { %v753_v61 = vpop.f32.mrf.mxu1 }
 0x17b   : > { %v789_v59 = vpop.f32.mrf.mxu0  ;;  %v811_v61 = vadd.f32 %v1923_v57, %v2334_v31  ;;  %v647_v31 = vadd.f32 %v2344_v49, %v2330_v19 }
 0x17c   : > { %v805_v60 = vadd.f32 %v789_v59, %v643_v34  ;;  %v1929_v63 = vpop.f32.mrf.mxu1 }
 0x17d   : > { %v1924_v62 = vpop.f32.mrf.mxu0 }
 0x17e   : > { %v951_v1 = vpop.f32.mrf.mxu1 }
 0x17f   : > { %v792_v0 = vpop.f32.mrf.mxu0  ;;  %v2356_v2 = vadd.f32 %v951_v1, %v805_v60  ;;  %v478_v60 = vadd.f32 %v2336_v32, %v2328_v5 }
 0x180   : > { %v1930_v7 = vpop.f32.mrf.mxu1 }
 0x181   : > { %v900_v3 = vpop.f32.mrf.mxu0 }
 0x182   : > { %v965_v4 = vadd.f32 %v900_v3, %v803_v44  ;;  %v954_v10 = vpop.f32.mrf.mxu1  ;;  %v646_v3 = vadd.f32 %v2338_v40, %v478_v60  ;;  %v807_v40 = vadd.f32 %v2350_v52, %v2342_v46 }
 0x183   : > { %v902_v8 = vpop.f32.mrf.mxu0 }
 0x184   : > { %v966_v9 = vadd.f32 %v902_v8, %v804_v48  ;;  %v1062_v12 = vpop.f32.mrf.mxu1 }
 0x185   : > { %v904_v11 = vpop.f32.mrf.mxu0  ;;  %v2358_v13 = vadd.f32 %v1062_v12, %v965_v4  ;;  %v973_v4 = vadd.f32 %v1929_v63, %v811_v61 }
 0x186   : > { %v1064_v15 = vpop.f32.mrf.mxu1 }
 0x187   : > { %v906_v14 = vpop.f32.mrf.mxu0  ;;  %v2360_v6 = vadd.f32 %v1064_v15, %v966_v9  ;;  %v808_v9 = vadd.f32 %v792_v0, %v646_v3 }
 0x188   : > { %v1066_v17 = vpop.f32.mrf.mxu1 }
 0x189   : > { %v910_v16 = vpop.f32.mrf.mxu0 }
 0x18a   : > { %v1068_v20 = vpop.f32.mrf.mxu1 }
 0x18b   : > { %v2362_v18 = vpop.f32.mrf.mxu0 }
 0x18c   : > { %v2364_v23 = vpop.f32.mrf.mxu1 }
 0x18d   : > { %v914_v21 = vpop.f32.mrf.mxu0 }
 0x18e   : > { %v2366_v25 = vpop.f32.mrf.mxu1  ;;  %v806_v21 = vadd.f32 %v2346_v50, %v2340_v42  ;;  %v809_v42 = vadd.f32 %v2352_v54, %v647_v31 }
 0x18f   : > { %v915_v24 = vpop.f32.mrf.mxu0 }
 0x190   : > { %v1076_v27 = vpop.f32.mrf.mxu1  ;;  %v968_v32 = vadd.f32 %v904_v11, %v806_v21  ;;  %v971_v49 = vadd.f32 %v910_v16, %v809_v42 }
 0x191   : > { %v1935_v26 = vpop.f32.mrf.mxu0  ;;  %v970_v27 = vadd.f32 %v954_v10, %v808_v9 }
 0x192   : > { %v1077_v29 = vpop.f32.mrf.mxu1  ;;  %v1135_v12 = vadd.f32 %v1935_v26, %v973_v4  ;;  %v1130_v50 = vadd.f32 %v1066_v17, %v968_v32  ;;  %v1633_v17 = vpop.permute.xlu0 %1632 }
 0x193   : > { %v2368_v28 = vpop.f32.mrf.mxu0 }
 0x194   : > { %v1941_v33 = vpop.f32.mrf.mxu1 }
 0x195   : > { %v1936_v30 = vpop.f32.mrf.mxu0  ;;  %v1297_v29 = vadd.f32 %v1941_v33, %v1135_v12  ;;  %v969_v33 = vadd.f32 %v906_v14, %v807_v40 }
 0x196   : > { %v2370_v35 = vpop.f32.mrf.mxu1  ;;  %v648_v30 = vadd.f32 %v2348_v51, %v2332_v22  ;;  %v1133_v51 = vadd.f32 %v2364_v23, %v971_v49 }
 0x197   : > { %v1116_v34 = vpop.f32.mrf.mxu0  ;;  %v1131_v52 = vadd.f32 %v1068_v20, %v969_v33 }
 0x198   : > { %v1942_v37 = vpop.f32.mrf.mxu1  ;;  %v1132_v63 = vadd.f32 %v1116_v34, %v970_v27  ;;  %v810_v19 = vadd.f32 %v2354_v56, %v648_v30  ;;  %v1638_v34 = vpop.permute.xlu1 %1637 }
 0x199   : > { %v2372_v36 = vpop.f32.mrf.mxu0 }
 0x19a   : > { %v1278_v39 = vpop.f32.mrf.mxu1  ;;  %v972_v22 = vadd.f32 %v2362_v18, %v810_v19 }
 0x19b   : > { %v2374_v38 = vpop.f32.mrf.mxu0  ;;  %v1294_v37 = vadd.f32 %v1278_v39, %v1132_v63 }
 0x19c   : > { %v2376_v43 = vpop.f32.mrf.mxu1  ;;  %v1134_v56 = vadd.f32 %v2366_v25, %v972_v22  ;;  %v1628_v19 = vpop.permute.xlu1 %1627 }
 0x19d   : > { %v1228_v41 = vpop.f32.mrf.mxu0 }
 0x19e   : > { %v2378_v45 = vpop.f32.mrf.mxu1  ;;  %v1292_v11 = vadd.f32 %v1228_v41, %v1130_v50 }
 0x19f   : > { %v1230_v44 = vpop.f32.mrf.mxu0 }
 0x1a0   : > { %v1390_v48 = vpop.f32.mrf.mxu1  ;;  %v1293_v39 = vadd.f32 %v1230_v44, %v1131_v52 }
 0x1a1   : > { %v1234_v47 = vpop.f32.mrf.mxu0  ;;  %v1454_v54 = vadd.f32 %v1390_v48, %v1292_v11 }
 0x1a2   : > { %v1392_v55 = vpop.f32.mrf.mxu1  ;;  %v1295_v16 = vadd.f32 %v1234_v47, %v1133_v51 }
 0x1a3   : > { %v1236_v53 = vpop.f32.mrf.mxu0  ;;  %v1455_v20 = vadd.f32 %v1392_v55, %v1293_v39 }
 0x1a4   : > { %v1396_v59 = vpop.f32.mrf.mxu1  ;;  %v1296_v12 = vadd.f32 %v1236_v53, %v1134_v56 }
 0x1a5   : > { %v1238_v58 = vpop.f32.mrf.mxu0  ;;  %v1457_v21 = vadd.f32 %v1396_v59, %v1295_v16 }
 0x1a6   : > { %v1398_v1 = vpop.f32.mrf.mxu1 }
 0x1a7   : > { %v1239_v62 = vpop.f32.mrf.mxu0  ;;  %v1458_v48 = vadd.f32 %v1398_v1, %v1296_v12  ;;  %v1129_v1 = vadd.f32 %v2368_v28, %v2356_v2  ;;  %v1290_v2 = vadd.f32 %v2374_v38, %v2360_v6 }
 0x1a8   : > { %v1400_v8 = vpop.f32.mrf.mxu1 }
 0x1a9   : > { %v1947_v7 = vpop.f32.mrf.mxu0  ;;  %v1291_v42 = vadd.f32 %v2370_v35, %v1129_v1 }
 0x1aa   : > { %v1401_v24 = vpop.f32.mrf.mxu1  ;;  %v1459_v0 = vadd.f32 %v1947_v7, %v1297_v29 }
 0x1ab   : > { %v2384_v15 = vpop.f32.mrf.mxu0 }
 0x1ac   : > { %v1953_v57 = vpop.f32.mrf.mxu1  ;;  %v1453_v50 = vadd.f32 %v2384_v15, %v1291_v42 }
 0x1ad   : > { %v1948_v5 = vpop.f32.mrf.mxu0  ;;  %v1621_v58 = vadd.f32 %v1953_v57, %v1459_v0 }
 0x1ae   : > { %v1599_v10 = vpop.f32.mrf.mxu1 }
 0x1af   : > { %v1440_v26 = vpop.f32.mrf.mxu0  ;;  %v1648_v3 = vadd.f32 %v1638_v34, %v1621_v58  ;;  %v1615_v33 = vadd.f32 %v1599_v10, %v1453_v50  ;;  %v1289_v58 = vadd.f32 %v2372_v36, %v2358_v13  ;;  %v1452_v10 = vadd.f32 %v2378_v45, %v1290_v2 }
 0x1b0   : > { %v1954_v46 = vpop.f32.mrf.mxu1  ;;  %v1456_v61 = vadd.f32 %v1440_v26, %v1294_v37 }
 0x1b1   : > { %v2395_v60 = vpop.f32.mrf.mxu0  ;;  %v1654_v24 = vmul.f32 %v1648_v3, %v1648_v3  ;;  %v1451_v11 = vadd.f32 %v2376_v43, %v1289_v58  ;;  %v1642_v28 = vadd.f32 %v1628_v19, %v1615_v33 }
 0x1b2   : > { %v1602_v14 = vpop.f32.mrf.mxu1 }
 0x1b3   : > { %v2398_v62 = vpop.f32.mrf.mxu0  ;;  %v1618_v4 = vadd.f32 %v1602_v14, %v1456_v61  ;;  %v1613_v15 = vadd.f32 %v2395_v60, %v1451_v11 }
 0x1b5   : > { %v1552_v7 = vpop.f32.mrf.mxu0  ;;  %v1645_v8 = vadd.f32 %v1633_v17, %v1618_v4  ;;  %v1640_v61 = vadd.f32 %v1628_v19, %v1613_v15 }
 0x1b6   : > { %v1616_v41 = vadd.f32 %v1552_v7, %v1454_v54 }
 0x1b7   : > { %v1554_v9 = vpop.f32.mrf.mxu0  ;;  %v1651_v18 = vmul.f32 %v1645_v8, %v1645_v8 }
 0x1b8   : > { %v1617_v27 = vadd.f32 %v1554_v9, %v1455_v20  ;;  %v1643_v29 = vadd.f32 %v1633_v17, %v1616_v41 }
 0x1b9   : > { %v1558_v23 = vpop.f32.mrf.mxu0  ;;  %v1657_v44 = vadd.f32 %v1654_v24, %v1651_v18 }
 0x1ba   : > { %v1619_v5 = vadd.f32 %v1558_v23, %v1457_v21  ;;  %v1644_v25 = vadd.f32 %v1633_v17, %v1617_v27  ;;  %v1649_v55 = vmul.f32 %v1643_v29, %v1643_v29 }
 0x1bb   : > { %v1560_v31 = vpop.f32.mrf.mxu0  ;;  %2028 = vrsqrt.f32 %v1657_v44  ;;  %vm1674_vm10 = vcmp.eq.f32.partialorder %v1657_v44, inf  ;;  %v1677_v46 = vand.u32 2147483648, %v1657_v44  ;;  %vm1676_vm11 = vcmp.eq.f32.partialorder %v1657_v44, 0.0 }
 0x1bc   : > { %v1646_v32 = vadd.f32 %v1638_v34, %v1619_v5  ;;  %v1620_v57 = vadd.f32 %v1560_v31, %v1458_v48  ;;  %v1650_v26 = vmul.f32 %v1644_v25, %v1644_v25 }
 0x1bd   : > { %v1562_v47 = vpop.f32.mrf.mxu0 }
 0x1be   : > { %v1652_v40 = vmul.f32 %v1646_v32, %v1646_v32  ;;  %v1647_v63 = vadd.f32 %v1638_v34, %v1620_v57  ;;  %v1614_v34 = vadd.f32 %v2398_v62, %v1452_v10 }
 0x1bf   : > { %v1563_v53 = vpop.f32.mrf.mxu0 }
 0x1c0   : > { %v1655_v59 = vadd.f32 %v1652_v40, %v1649_v55  ;;  %v1653_v0 = vmul.f32 %v1647_v63, %v1647_v63  ;;  %v1641_v17 = vadd.f32 %v1628_v19, %v1614_v34 }
 0x1c2   : > { %2030 = vrsqrt.f32 %v1655_v59  ;;  %v1656_v30 = vadd.f32 %v1653_v0, %v1650_v26  ;;  %vm1660_vm13 = vcmp.eq.f32.partialorder %v1655_v59, inf  ;;  %v1663_v6 = vand.u32 2147483648, %v1655_v59 }
 0x1c3   : > { %vm1662_vm14 = vcmp.eq.f32.partialorder %v1655_v59, 0.0 }
 0x1c4   : > { %2032 = vrsqrt.f32 %v1656_v30  ;;  %vm1667_vm15 = vcmp.eq.f32.partialorder %v1656_v30, inf  ;;  %v1670_v60 = vand.u32 2147483648, %v1656_v30  ;;  %vm1669_vm0 = vcmp.eq.f32.partialorder %v1656_v30, 0.0 }
 0x1c8   : > { %v2029_v37 = vpop.eup %2028 }
 0x1c9   : > { %v1673_v49 = vmul.f32 %v2029_v37, %v1657_v44 }
 0x1cb   : > { %v1675_v35 = vsel %vm1674_vm10, %v1657_v44, %v1673_v49 }
 0x1cc   : > { %v1678_v13 = vsel %vm1676_vm11, %v1677_v46, %v1675_v35 }
 0x1cd   : > { %v1681_v43 = vmul.f32 %v1678_v13, %v1642_v28 }
 0x1cf   : > { %v2031_v36 = vpop.eup %2030  ;;  %1685 = vst.msk [vmem:[%s206_s27 + $0x10] sm:$0xff] %vm1684_vm12, %v1681_v43 }
 0x1d0   : > { %v1659_v52 = vmul.f32 %v2031_v36, %v1655_v59 }
 0x1d1   : > { %v2033_v38 = vpop.eup %2032 }
 0x1d2   : > { %v1661_v22 = vsel %vm1660_vm13, %v1655_v59, %v1659_v52  ;;  %v1666_v54 = vmul.f32 %v2033_v38, %v1656_v30 }
 0x1d3   : > { %v1664_v51 = vsel %vm1662_vm14, %v1663_v6, %v1661_v22 }
 0x1d4   : > { %v1679_v14 = vmul.f32 %v1664_v51, %v1640_v61  ;;  %v1668_v39 = vsel %vm1667_vm15, %v1656_v30, %v1666_v54 }
 0x1d5   : > { %v1671_v45 = vsel %vm1669_vm0, %v1670_v60, %v1668_v39 }
 0x1d6   : > { %1682 = vst [vmem:[%s206_s27] sm:$0xff] %v1679_v14  ;;  %v1680_v3 = vmul.f32 %v1671_v45, %v1641_v17 }
 0x1d8   : > { %1683 = vst [vmem:[%s206_s27 + $0x8] sm:$0xff] %v1680_v3 }
 0x1d9 PF: > { %s13_s14 = sadd.s32 1, %s2056_s14   ;;  %s2432_s12 = smov %s2052_s13 }
 0x1da   : > { %p10_p5 = scmp.ge.s32.totalorder %s13_s14, 4   ;;  %s2433_s13 = smov %s2435_s15 }
 0x1dc   :  { %12 = sbr.rel (!%p10_p5) target bundleno = 2 (0x2), region = 70 }

</bundles_post_ra>
